<compile_context>
chip_gen: v7x
topology: tpu7x:2x2x1
jax: 0.10.0
libtpu: 0.0.40
codegen_flags: <defaults>
</compile_context>

<pallas_src>
import jax
import jax.numpy as jnp
from jax.experimental import pallas as pl
from jax.experimental.pallas import tpu as pltpu

IN_FEATURES = 10
HIDDEN = 20
OUT_FEATURES = 10
LANE = 128
DEFAULT_B_TILE = 16384  # lanes per grid step; ~1 MiB/padded buffer in f32


def _round_up(x, m):
    return ((x + m - 1) // m) * m


def mlp_kernel(xT_ref, w1_ref, b1_ref, w2_ref, b2_ref, oT_ref):
    # xT_ref: (10, B_TILE)   w1_ref: (20, 10)  b1_ref: (20, 1)
    # w2_ref: (10, 20)       b2_ref: (10, 1)   oT_ref: (10, B_TILE)
    xT = xT_ref[...].astype(jnp.float32)

    # Hidden layer: (20, 10) @ (10, B) + (20, 1) -> ReLU
    h = jnp.dot(w1_ref[...].astype(jnp.float32), xT,
                preferred_element_type=jnp.float32)
    h = jnp.maximum(h + b1_ref[...].astype(jnp.float32), 0.0)

    # Output layer: (10, 20) @ (20, B) + (10, 1)
    out = jnp.dot(w2_ref[...].astype(jnp.float32), h,
                  preferred_element_type=jnp.float32)
    out = out + b2_ref[...].astype(jnp.float32)

    oT_ref[...] = out.astype(oT_ref.dtype)


def manual_model_0_forward(x, w1, b1, w2, b2, *, b_tile=DEFAULT_B_TILE):
    """Forward pass matching the PyTorch module semantics.

    Weights use the PyTorch (out_features, in_features) layout:
      w1: (20, 10), b1: (20,), w2: (10, 20), b2: (10,)
    """
    # nn.Flatten is applied only when ndim > 1 (mirrors the PyTorch guard);
    # a 1-D input is treated as a single unbatched (10,) vector.
    unbatched = x.ndim == 1
    if unbatched:
        x = x.reshape(1, IN_FEATURES)
    elif x.ndim > 2:
        x = x.reshape(x.shape[0], -1)

    batch = x.shape[0]
    assert x.shape[1] == IN_FEATURES, f"expected {IN_FEATURES} flattened features"

    # Choose the batch tile: a multiple of 128 lanes, no larger than needed.
    b_tile = min(_round_up(b_tile, LANE), _round_up(max(batch, 1), LANE))
    padded = _round_up(batch, b_tile)
    grid = padded // b_tile

    if padded != batch:
        x = jnp.pad(x, ((0, padded - batch), (0, 0)))

    # Transposed (features, batch) layout: batch on the lane axis (lane-dense).
    xT = x.T  # (10, padded)

    # Biases as columns, broadcast over lanes inside the kernel.
    b1_col = b1.reshape(HIDDEN, 1)
    b2_col = b2.reshape(OUT_FEATURES, 1)

    itemsize = jnp.dtype(x.dtype).itemsize
    cost = pl.CostEstimate(
        flops=2 * padded * (IN_FEATURES * HIDDEN + HIDDEN * OUT_FEATURES),
        transcendentals=0,
        bytes_accessed=padded * (IN_FEATURES + OUT_FEATURES) * itemsize,
    )

    out_T = pl.pallas_call(
        mlp_kernel,
        out_shape=jax.ShapeDtypeStruct((OUT_FEATURES, padded), x.dtype),
        grid=(grid,),
        in_specs=[
            # x tile marches along the batch (lane) axis.
            pl.BlockSpec((IN_FEATURES, b_tile), lambda i: (0, i)),
            # Weights/biases: constant block index -> VMEM-resident across steps.
            pl.BlockSpec((HIDDEN, IN_FEATURES), lambda i: (0, 0)),
            pl.BlockSpec((HIDDEN, 1), lambda i: (0, 0)),
            pl.BlockSpec((OUT_FEATURES, HIDDEN), lambda i: (0, 0)),
            pl.BlockSpec((OUT_FEATURES, 1), lambda i: (0, 0)),
        ],
        out_specs=pl.BlockSpec((OUT_FEATURES, b_tile), lambda i: (0, i)),
        compiler_params=pltpu.CompilerParams(
            dimension_semantics=("parallel",),
        ),
        cost_estimate=cost,
    )(xT, w1, b1_col, w2, b2_col)

    out = out_T.T[:batch]  # back to (batch, 10); drop batch padding
    if unbatched:
        out = out[0]
    return out


def init_params(key):
    """PyTorch-style init; weights in (out_features, in_features) layout."""
    k1, k2, k3, k4 = jax.random.split(key, 4)
    lim1 = 1.0 / jnp.sqrt(IN_FEATURES)
    lim2 = 1.0 / jnp.sqrt(HIDDEN)
    w1 = jax.random.uniform(k1, (HIDDEN, IN_FEATURES), jnp.float32, -lim1, lim1)
    b1 = jax.random.uniform(k2, (HIDDEN,), jnp.float32, -lim1, lim1)
    w2 = jax.random.uniform(k3, (OUT_FEATURES, HIDDEN), jnp.float32, -lim2, lim2)
    b2 = jax.random.uniform(k4, (OUT_FEATURES,), jnp.float32, -lim2, lim2)
    return w1, b1, w2, b2


if __name__ == "__main__":
    key = jax.random.PRNGKey(0)
    k_params, k_x = jax.random.split(key)
    w1, b1, w2, b2 = init_params(k_params)

    # Input that requires flattening: (batch=8, 2, 5) -> flatten -> (8, 10).
    x = jax.random.normal(k_x, (8, 2, 5), jnp.float32)

    out = manual_model_0_forward(x, w1, b1, w2, b2)
    out = jax.block_until_ready(out)

    # Pure-JAX reference (PyTorch semantics: y = x @ W.T + b).
    x_flat = x.reshape(x.shape[0], -1)
    ref = jnp.maximum(x_flat @ w1.T + b1, 0.0) @ w2.T + b2
    assert out.shape == (8, OUT_FEATURES)
    assert jnp.allclose(out, ref, atol=1e-5, rtol=1e-5)

    # Unbatched 1-D input path (PyTorch skips flatten when ndim == 1).
    x1 = jax.random.normal(jax.random.PRNGKey(1), (IN_FEATURES,), jnp.float32)
    out1 = jax.block_until_ready(manual_model_0_forward(x1, w1, b1, w2, b2))
    ref1 = jnp.maximum(x1 @ w1.T + b1, 0.0) @ w2.T + b2
    assert out1.shape == (OUT_FEATURES,)
    assert jnp.allclose(out1, ref1, atol=1e-5, rtol=1e-5)

    print("KERNEL_OK")
</pallas_src>

<mosaic_0001>
module attributes {stable_mosaic.version = 11 : i64} {
  func.func @mlp_kernel(%arg0: i32, %arg1: memref<10x128xf32, #tpu.memory_space<vmem>>, %arg2: memref<20x10xf32, #tpu.memory_space<vmem>>, %arg3: memref<20x1xf32, #tpu.memory_space<vmem>>, %arg4: memref<10x20xf32, #tpu.memory_space<vmem>>, %arg5: memref<10x1xf32, #tpu.memory_space<vmem>>, %arg6: memref<10x128xf32, #tpu.memory_space<vmem>>) attributes {dimension_semantics = [#tpu.dimension_semantics<parallel>], iteration_bounds = array<i64: 1>, scalar_prefetch = 0 : i64, scratch_operands = 0 : i64, tpu.core_type = #tpu.core_type<tc>, window_params = [{transform_indices = @transform_0, window_bounds = array<i64: 10, 128>}, {pipeline_mode = #tpu.pipeline_mode<synchronous>, transform_indices = @transform_1, window_bounds = array<i64: 20, 10>}, {pipeline_mode = #tpu.pipeline_mode<synchronous>, transform_indices = @transform_2, window_bounds = array<i64: 20, 1>}, {pipeline_mode = #tpu.pipeline_mode<synchronous>, transform_indices = @transform_3, window_bounds = array<i64: 10, 20>}, {pipeline_mode = #tpu.pipeline_mode<synchronous>, transform_indices = @transform_4, window_bounds = array<i64: 10, 1>}, {transform_indices = @transform_5, window_bounds = array<i64: 10, 128>}]} {
    %c0 = arith.constant 0 : index
    %c0_0 = arith.constant 0 : index
    %0 = vector.load %arg1[%c0, %c0_0] : memref<10x128xf32, #tpu.memory_space<vmem>>, vector<10x128xf32>
    %c0_1 = arith.constant 0 : index
    %c0_2 = arith.constant 0 : index
    %1 = vector.load %arg2[%c0_1, %c0_2] : memref<20x10xf32, #tpu.memory_space<vmem>>, vector<20x10xf32>
    %cst = arith.constant dense<0.000000e+00> : vector<20x128xf32>
    %2 = tpu.matmul %1, %0, %cst {dimension_numbers = #tpu.dot_dimension_numbers<[1], [0], [0], [1], [0, 0, 1, 1], [], []>} : vector<20x10xf32>, vector<10x128xf32>, vector<20x128xf32> -> vector<20x128xf32>
    %c0_3 = arith.constant 0 : index
    %c0_4 = arith.constant 0 : index
    %3 = vector.load %arg3[%c0_3, %c0_4] : memref<20x1xf32, #tpu.memory_space<vmem>>, vector<20x1xf32>
    %4 = vector.broadcast %3 : vector<20x1xf32> to vector<20x128xf32>
    %5 = arith.addf %2, %4 : vector<20x128xf32>
    %cst_5 = arith.constant 0.000000e+00 : f32
    %6 = vector.broadcast %cst_5 : f32 to vector<20x128xf32>
    %7 = arith.maximumf %5, %6 : vector<20x128xf32>
    %c0_6 = arith.constant 0 : index
    %c0_7 = arith.constant 0 : index
    %8 = vector.load %arg4[%c0_6, %c0_7] : memref<10x20xf32, #tpu.memory_space<vmem>>, vector<10x20xf32>
    %cst_8 = arith.constant dense<0.000000e+00> : vector<10x128xf32>
    %9 = tpu.matmul %8, %7, %cst_8 {dimension_numbers = #tpu.dot_dimension_numbers<[1], [0], [0], [1], [0, 0, 1, 1], [], []>} : vector<10x20xf32>, vector<20x128xf32>, vector<10x128xf32> -> vector<10x128xf32>
    %c0_9 = arith.constant 0 : index
    %c0_10 = arith.constant 0 : index
    %10 = vector.load %arg5[%c0_9, %c0_10] : memref<10x1xf32, #tpu.memory_space<vmem>>, vector<10x1xf32>
    %11 = vector.broadcast %10 : vector<10x1xf32> to vector<10x128xf32>
    %12 = arith.addf %9, %11 : vector<10x128xf32>
    %c0_11 = arith.constant 0 : index
    %c0_12 = arith.constant 0 : index
    %13 = vector.load %arg6[%c0_11, %c0_12] : memref<10x128xf32, #tpu.memory_space<vmem>>, vector<10x128xf32>
    tpu.vector_store %arg6[%c0_11, %c0_12], %12 {strides = array<i32>} : memref<10x128xf32, #tpu.memory_space<vmem>>, vector<10x128xf32>,
    return
  }
  func.func @transform_0(%arg0: i32) -> (i32, i32) {
    %c0_i32 = arith.constant 0 : i32
    %c0_i32_0 = arith.constant 0 : i32
    return %c0_i32, %arg0 : i32, i32
  }
  func.func @transform_1(%arg0: i32) -> (i32, i32) {
    %c0_i32 = arith.constant 0 : i32
    %c0_i32_0 = arith.constant 0 : i32
    %c0_i32_1 = arith.constant 0 : i32
    return %c0_i32, %c0_i32_0 : i32, i32
  }
  func.func @transform_2(%arg0: i32) -> (i32, i32) {
    %c0_i32 = arith.constant 0 : i32
    %c0_i32_0 = arith.constant 0 : i32
    %c0_i32_1 = arith.constant 0 : i32
    return %c0_i32, %c0_i32_0 : i32, i32
  }
  func.func @transform_3(%arg0: i32) -> (i32, i32) {
    %c0_i32 = arith.constant 0 : i32
    %c0_i32_0 = arith.constant 0 : i32
    %c0_i32_1 = arith.constant 0 : i32
    return %c0_i32, %c0_i32_0 : i32, i32
  }
  func.func @transform_4(%arg0: i32) -> (i32, i32) {
    %c0_i32 = arith.constant 0 : i32
    %c0_i32_0 = arith.constant 0 : i32
    %c0_i32_1 = arith.constant 0 : i32
    return %c0_i32, %c0_i32_0 : i32, i32
  }
  func.func @transform_5(%arg0: i32) -> (i32, i32) {
    %c0_i32 = arith.constant 0 : i32
    %c0_i32_0 = arith.constant 0 : i32
    return %c0_i32, %arg0 : i32, i32
  }
}

</mosaic_0001>

<bundles_post_ra>
// kernel: tpu_custom_call.1
= control target key start
LH: loop header
LB: loop body
LE: loop exit
PB: predicated region body
PF: predicated region fallthrough
CT: control target
= control target key end

     0   :  { %vm54_vm0 = vcmask 1041408   ;;  %v340_v2 = vmov 0.0|0.0   ;;  %vm341_vm1 = vmmov 1   ;;  %vm342_vm3 = vmmov 0   ;;  %s434_s0 = inlined_call_operand.vmem [shape: f32[10,128], index: 0, kind: input, shape index: {}]   ;;  %s435_s1 = inlined_call_operand.vmem [shape: f32[20,10], index: 1, kind: input, shape index: {}]   ;;  %s436_s2 = inlined_call_operand.vmem [shape: f32[20,1], index: 2, kind: input, shape index: {}]   ;;  %s437_s3 = inlined_call_operand.vmem [shape: f32[10,20], index: 3, kind: input, shape index: {}]   ;;  %s438_s4 = inlined_call_operand.vmem [shape: f32[10,1], index: 4, kind: input, shape index: {}]   ;;  %s439_s5 = inlined_call_operand.hbm [shape: f32[10,128], index: 5, kind: output, shape index: {}]  }
   0x1   :  { %v21_v0 = vld [vmem:[%s434_s0] sm:$0xff]  ;;  %v22_v1 = vld [vmem:[%s434_s0 + $0x8] sm:$0x3]  ;;  %298 = vmatprep.subr.bf16.mxu0 %v340_v2  ;;  %vm300_vm2 = vmpackc.low %vm54_vm0, %vm341_vm1  ;;  %v343_v4 = vmov 0.0   ;;  %vm44_vm4 = vcmask 80896   ;;  %v344_v7 = vmov 0  }
   0x2   :  { %v299_v3 = vpack.c.bf16 %v22_v1, %v21_v0  ;;  %280 = vmatprep.mubr.msk.f32.mxu0 %vm342_vm3, %v343_v4  ;;  %v26_v5 = vld [vmem:[%s436_s2] sm:$0xff]  ;;  %314 = vset.pattern.permute.xlu0 %v344_v7  ;;  %v28_v8 = vld [vmem:[%s436_s2 + $0x10] sm:$0xf] }
   0x3   :  { %v23_v6 = vld [vmem:[%s435_s1] sm:$0xff]  ;;  %31 = vperm.xlu0 %314, %v26_v5   ;;  %315 = vset.pattern.permute.xlu1 %v344_v7 }
   0x4   :  { %301 = vmatpush3.bf16.msk.msra.mxu0 %vm300_vm2, %v299_v3 }
   0x5   :  { %10 = vsyncpa [#allocation3], 0  ;;  %v27_v9 = vld [vmem:[%s436_s2 + $0x8] sm:$0xff]  ;;  %41 = vperm.xlu1 %315, %v28_v8   ;;  %v143_v10 = vld [vmem:[%s438_s4] sm:$0xff]  ;;  %vm155_vm5 = vcmask 162816   ;;  %vm162_vm6 = vcmask 1043456  }
   0x6   :  { %v24_v11 = vld [vmem:[%s435_s1 + $0x8] sm:$0xff]  ;;  %v25_v13 = vld [vmem:[%s435_s1 + $0x10] sm:$0xf]  ;;  %v141_v14 = vld [vmem:[%s437_s3] sm:$0xff]  ;;  %s345_s13 = smov [#allocation2]  }
   0x7   :  { %281 = vmatmul.mubr.msk.f32.vlgmr.msra.gmra.mrb[0].mxu0 %vm44_vm4, %v23_v6  ;;  %36 = vperm.xlu0 %314, %v27_v9   ;;  %v144_v12 = vld [vmem:[%s438_s4 + $0x8] sm:$0x3]  ;;  %s248_s14 = sshll.u32 %s345_s13, 4  ;;  %s249_s14 = int_to_ptr.vmem [resolvable:$true] %s248_s14 }
   0x8   :  { %283 = vmatprep.mubr.msk.f32.mxu0 %vm342_vm3, %v343_v4  ;;  %295 = vmatprep.mubr.msk.f32.mxu1 %vm155_vm5, %v141_v14  ;;  %v142_v31 = vld [vmem:[%s437_s3 + $0x8] sm:$0x3]  ;;  %s316_s15 = scalar_lea.vmem %s249_s14, 256  ;;  %p321_p1 = scmp.lt.s32.totalorder %s249_s14, %s249_s14 }
   0x9   :  { %147 = vperm.xlu1 %315, %v143_v10   ;;  %p317_p0 = scmp.ne.s32.totalorder %s249_s14, %s316_s15  ;;  %p322_p2 = scmp.lt.s32.totalorder %s316_s15, %s316_s15 }
   0xb   :  { %284 = vmatmul.mubr.msk.f32.gmra.mrb[2].mxu0 %vm44_vm4, %v24_v11  ;;  %152 = vperm.xlu0 %314, %v144_v12   ;;  %p323_p3 = por %p322_p2, %p321_p1 }
   0xc   :  { %286 = vmatprep.mubr.msk.f32.mxu0 %vm342_vm3, %v343_v4 }
   0xd   :  { %p324_p4 = pnand %p323_p3, %p317_p0 }
   0xf   :  { %287 = vmatmul.mubr.msk.f32.gmra.mrb[4].mxu0 %vm44_vm4, %v25_v13 }
  0x82   :  { %v32_v15 = vpop.permute.xlu0 %31 }
  0x84   :  { %v42_v25 = vpop.permute.xlu1 %41 }
  0x86   :  { %v37_v19 = vpop.permute.xlu0 %36 }
  0x88   :  { %v148_v34 = vpop.permute.xlu1 %147 }
  0x8a   :  { %v153_v32 = vpop.permute.xlu0 %152 }
  0xda   :  { %v124_v16 = vpop.f32.mrb[0].mxu0 }
  0xdb   :  { %v282_v17 = vpop.f32.mrb[1].mxu0  ;;  %v125_v18 = vadd.f32 %v124_v16, %v32_v15 }
  0xdd   :  { %v138_v23 = vmax.f32 %v125_v18, 0.0 }
  0xde   :  { %v129_v20 = vpop.f32.mrb[2].mxu0 }
  0xdf   :  { %v130_v21 = vadd.f32 %v129_v20, %v37_v19  ;;  %v285_v22 = vpop.f32.mrb[3].mxu0 }
  0xe1   :  { %v139_v24 = vmax.f32 %v130_v21, 0.0 }
  0xe2   :  { %v134_v26 = vpop.f32.mrb[4].mxu0 }
  0xe3   :  { %v135_v27 = vadd.f32 %v134_v26, %v42_v25  ;;  %v288_v28 = vpop.f32.mrb[5].mxu0  ;;  %v302_v29 = vpack.c.bf16 %v139_v24, %v138_v23 }
  0xe5   :  { %v140_v30 = vmax.f32 %v135_v27, 0.0  ;;  %303 = vmatprep.subr.bf16.mxu1 %v302_v29 }
  0xe6   :  { %305 = vmatpush3.bf16.msra.mxu1 %v302_v29 }
  0xe7   :  { %293 = vmatprep.subr.msk.mxu1 %vm162_vm6, %v140_v30 }
  0xea   :  { %294 = vmatpush3.msk.msra.mxu1 %vm162_vm6, %v140_v30 }
  0xeb   :  { %296 = vmatmul.mubr.msk.f32.vlgmr.msra.gmra.mrb[0].mxu1 %vm155_vm5, %v142_v31 }
 0x1be   :  { %v297_v33 = vpop.f32.mrb[0].mxu1 }
 0x1bf   :  { %v238_v35 = vadd.f32 %v297_v33, %v153_v32  ;;  %v232_v36 = vpop.f32.mrb[1].mxu1 }
 0x1c0   :  { %v233_v37 = vadd.f32 %v232_v36, %v148_v34 }
 0x1c1   :  { %242 = vst [vmem:[#allocation2 + $0x8] sm:$0x3] %v238_v35 }
 0x1c2   :  { %241 = vst [vmem:[#allocation2] sm:$0xff] %v233_v37 }
 0x1c3   :  { %327 = shalt.err (!%p324_p4)
}
 0x1c4   :  { %s328_s17 = scalar_lea.hbm %s439_s5, 256 }
 0x1c5   :  { %p329_p5 = scmp.ne.s32.totalorder %s439_s5, %s328_s17  ;;  %p332_p6 = scmp.lt.u32.totalorder %s328_s17, %s439_s5 }
 0x1c7   :  { %p334_p7 = pnand %p332_p6, %p329_p5 }
 0x1c9   :  { %337 = shalt.err (!%p334_p7)
}
 0x1ca   :  { %s346_s22 = smov 128   ;;  %s347_s23 = smov 8  }
 0x1cb   :  { %254 = dma.vmem_to_hbm [thread:$0]  %s249_s14, 256, %s439_s5, [#allocation3], %s346_s22, %s346_s22, %s347_s23  }
 0x1cc   :  { %338 = dma.done.wait [#allocation3], 256  }
 0x1cd   :  { %339 = vsyncadd [#allocation3], 4294967040 }
 0x1ce   :  { %258 = vsyncpa [#allocation3], 1 }

</bundles_post_ra>
